<compile_context>
chip_gen: v7x
topology: tpu7x:2x2x1
jax: 0.10.0
libtpu: 0.0.40
codegen_flags: <defaults>
</compile_context>

<pallas_src>
import functools

import jax
import jax.numpy as jnp
from jax import lax
from jax.experimental import pallas as pl
from jax.experimental.pallas import tpu as pltpu


def _round_up(x, m):
    return (x + m - 1) // m * m


def fm_kernel(idx_ref, w_ref, out_ref, acc_ref, *, d_pad):
    # idx_ref : (F, TB)        int32   -- batch on lanes
    # w_ref   : (wc_pad, TN)   bf16    -- fused [V ; V^2 ; bias] table slice,
    #                                     transposed; column 0 of the full table
    #                                     is zero (idx==0 -> inactive)
    # out_ref : (1, TB)        f32     -- lane-dense output slab
    # acc_ref : (wc_pad, TB)   f32     -- VMEM accumulator across the N tiles
    k = pl.program_id(1)

    @pl.when(k == 0)
    def _init():
        acc_ref[...] = jnp.zeros_like(acc_ref)

    idx = idx_ref[...]                                     # (F, TB) int32
    w = w_ref[...]                                         # (wc_pad, TN) bf16
    n_slots, tb = idx.shape
    tn = w.shape[1]

    # counts[n, b] = #{f : idx[b, f] == base + n}; duplicates handled exactly.
    # Streamed over the F slots (F small & static); accumulated in int32 and
    # cast to the matmul dtype once.
    base = k * tn
    iota_n = lax.broadcasted_iota(jnp.int32, (tn, tb), 0) + base
    counts = jnp.zeros((tn, tb), jnp.int32)
    for f in range(n_slots):
        counts = counts + (idx[f : f + 1, :] == iota_n).astype(jnp.int32)
    counts = counts.astype(w.dtype)                        # exact small ints in bf16

    # One MXU matmul per (batch tile, N tile): rows [0, D_pad) -> sum_f v,
    # rows [D_pad, 2*D_pad) -> sum_f v^2, row 2*D_pad -> bias sum.
    acc_ref[...] += jnp.dot(w, counts, preferred_element_type=jnp.float32)

    @pl.when(k == pl.num_programs(1) - 1)
    def _finalize():
        acc = acc_ref[...]                                 # (wc_pad, TB) f32
        s = acc[0:d_pad, :]                                # padded rows are 0
        q = acc[d_pad : 2 * d_pad, :]
        bias_sum = acc[2 * d_pad : 2 * d_pad + 1, :]
        fm = 0.5 * jnp.sum(s * s - q, axis=0, keepdims=True)
        out_ref[...] = bias_sum + fm


def fm_forward(idx, bias_weight, vect_weight, *, max_batch_tile=512,
               max_n_tile=1024, table_dtype=jnp.bfloat16):
    """idx: (B, F) int, bias_weight: (N, 1) f32, vect_weight: (N, D) f32 -> (B,) f32."""
    B, F = idx.shape
    N, D = vect_weight.shape

    # --- sublane-aligned fused-table layout ----------------------------------
    d_pad = _round_up(D, 8)
    wc_pad = _round_up(2 * d_pad + 1, 8)       # rows: V | V^2 | bias (+ zero pad)

    # --- vocabulary tiling -----------------------------------------------------
    n_min = _round_up(max(N, 8), 8)
    if n_min <= max_n_tile:
        tn = n_min                              # single tile: 8-padded, full-array block
        n_pad = tn
    else:
        tn = max_n_tile                         # multiple of 128
        n_pad = _round_up(N, tn)

    # --- fused table [V ; V^2 ; bias], transposed (vocab on lanes) -----------
    w_fused = jnp.zeros((wc_pad, n_pad), jnp.float32)
    w_fused = w_fused.at[0:D, 0:N].set(vect_weight.T)
    w_fused = w_fused.at[d_pad : d_pad + D, 0:N].set((vect_weight * vect_weight).T)
    w_fused = w_fused.at[2 * d_pad, 0:N].set(bias_weight[:, 0])
    w_fused = w_fused.at[:, 0].set(0.0)         # idx == 0 slots are inactive
    w_fused = w_fused.astype(table_dtype)

    # --- batch tiling: >=128 lanes so output stores stay unmasked ------------
    if B <= max_batch_tile:
        tb = _round_up(max(B, 128), 128)
        b_pad = tb
    else:
        tb = max_batch_tile                      # multiple of 128
        b_pad = _round_up(B, tb)

    idx_pad = jnp.zeros((b_pad, F), jnp.int32).at[:B, :].set(idx.astype(jnp.int32))
    idx_t = idx_pad.T                            # (F, B_pad) — batch on lanes

    grid = (b_pad // tb, n_pad // tn)            # (parallel batch, arbitrary vocab)

    # --- VMEM budget (blocks + in-kernel counts temporaries), with headroom --
    itemsize = jnp.dtype(table_dtype).itemsize
    blk_bytes = (wc_pad * tn * itemsize * 2      # table block, double-buffered
                 + F * tb * 4 * 2                # idx block, double-buffered
                 + tb * 4 * 2                    # out block, double-buffered
                 + wc_pad * tb * 4)              # f32 accumulator scratch
    tmp_bytes = tn * tb * (4 + 4 + itemsize)     # iota + int32 counts + cast counts
    vmem_limit = int(min(64 * 1024 * 1024,
                         max(16 * 1024 * 1024, 3 * (blk_bytes + tmp_bytes))))

    kernel = functools.partial(fm_kernel, d_pad=d_pad)
    out = pl.pallas_call(
        kernel,
        out_shape=jax.ShapeDtypeStruct((1, b_pad), jnp.float32),
        grid=grid,
        in_specs=[
            pl.BlockSpec((F, tb), lambda i, k: (0, i)),        # per-batch-tile indices
            pl.BlockSpec((wc_pad, tn), lambda i, k: (0, k)),   # fused-table N slice
        ],
        out_specs=pl.BlockSpec((1, tb), lambda i, k: (0, i)),  # lane-dense output
        scratch_shapes=[pltpu.VMEM((wc_pad, tb), jnp.float32)],
        compiler_params=pltpu.CompilerParams(
            dimension_semantics=("parallel", "arbitrary"),
            vmem_limit_bytes=vmem_limit,
        ),
    )(idx_t, w_fused)
    return out[0, :B]


def fm_reference(idx, bias_weight, vect_weight):
    """Pure-JAX (f32) mirror of the PyTorch forward, for validation."""
    biases = bias_weight[idx][:, :, 0]                     # (B, F)
    vectrs = vect_weight[idx]                              # (B, F, D)
    active = (idx > 0).astype(jnp.float32)
    bias_sum = (biases * active).sum(axis=1)
    v = vectrs * active[:, :, None]
    t0 = v.sum(axis=1) ** 2.0
    t1 = (v ** 2.0).sum(axis=1)
    fm = 0.5 * (t0 - t1)
    return bias_sum + fm.sum(axis=1)


def fm_reference_quantized(idx, bias_weight, vect_weight, dtype):
    """Reference with the same table quantization the kernel uses (tight check)."""
    bw = bias_weight.astype(dtype).astype(jnp.float32)
    vw = vect_weight.astype(dtype).astype(jnp.float32)
    vsq = (vect_weight * vect_weight).astype(dtype).astype(jnp.float32)
    active = (idx > 0).astype(jnp.float32)
    bias_sum = (bw[idx][:, :, 0] * active).sum(axis=1)
    v = vw[idx] * active[:, :, None]
    vq = vsq[idx] * active[:, :, None]
    t0 = v.sum(axis=1) ** 2.0
    t1 = vq.sum(axis=1)
    return bias_sum + (0.5 * (t0 - t1)).sum(axis=1)


if __name__ == "__main__":
    # Small shapes consistent with the module: n_features=32, n_dim=8, batch=2,
    # 8 active feature slots per example.
    n_features, n_dim = 32, 8
    batch, n_slots = 2, 8

    key = jax.random.PRNGKey(0)
    k_bias, k_vect, k_idx = jax.random.split(key, 3)

    # BiasedEmbedding params: bias Embedding(N,1), vect Embedding(N,D).
    bias_weight = jax.random.normal(k_bias, (n_features, 1), dtype=jnp.float32) * 0.01
    vect_weight = jax.random.normal(k_vect, (n_features, n_dim), dtype=jnp.float32) * 0.1
    glob_bias = jnp.array([0.01], dtype=jnp.float32)  # Parameter in __init__; not used in forward

    idx = jax.random.randint(k_idx, (batch, n_slots), 0, n_features, dtype=jnp.int32)

    out = jax.block_until_ready(fm_forward(idx, bias_weight, vect_weight))

    ref_f32 = fm_reference(idx, bias_weight, vect_weight)
    ref_bf16 = fm_reference_quantized(idx, bias_weight, vect_weight, jnp.bfloat16)

    assert out.shape == (batch,)
    # Tight check against the bf16-quantized reference (same table rounding).
    assert jnp.allclose(out, ref_bf16, atol=1e-4, rtol=1e-4), (out, ref_bf16)
    # Loose check against the full-precision reference (bf16 table rounding only).
    assert jnp.allclose(out, ref_f32, atol=3e-2, rtol=3e-2), (out, ref_f32)

    print("KERNEL_OK")
</pallas_src>

<mosaic_0001>
module attributes {stable_mosaic.version = 11 : i64} {
  func.func @fm_kernel(%arg0: i32, %arg1: i32, %arg2: memref<8x128xi32, #tpu.memory_space<vmem>>, %arg3: memref<24x32xbf16, #tpu.memory_space<vmem>>, %arg4: memref<1x128xf32, #tpu.memory_space<vmem>>, %arg5: memref<24x128xf32, #tpu.memory_space<vmem>>) attributes {dimension_semantics = [#tpu.dimension_semantics<parallel>, #tpu.dimension_semantics<arbitrary>], iteration_bounds = array<i64: 1, 1>, scalar_prefetch = 0 : i64, scratch_operands = 1 : i64, tpu.core_type = #tpu.core_type<tc>, window_params = [{transform_indices = @transform_0, window_bounds = array<i64: 8, 128>}, {transform_indices = @transform_1, window_bounds = array<i64: 24, 32>}, {transform_indices = @transform_2, window_bounds = array<i64: 1, 128>}]} {
    %c0_i32 = arith.constant 0 : i32
    %0 = arith.cmpi eq, %arg1, %c0_i32 : i32
    %1 = arith.extui %0 : i1 to i32
    %c0_i32_0 = arith.constant 0 : i32
    %2 = arith.cmpi ne, %1, %c0_i32_0 : i32
    scf.if %2 {
      %cst_11 = arith.constant 0.000000e+00 : f32
      %58 = vector.broadcast %cst_11 : f32 to vector<24x128xf32>
      %c0_12 = arith.constant 0 : index
      %c0_13 = arith.constant 0 : index
      %59 = vector.load %arg5[%c0_12, %c0_13] : memref<24x128xf32, #tpu.memory_space<vmem>>, vector<24x128xf32>
      tpu.vector_store %arg5[%c0_12, %c0_13], %58 {strides = array<i32>} : memref<24x128xf32, #tpu.memory_space<vmem>>, vector<24x128xf32>,
    } else {
    }
    %c0 = arith.constant 0 : index
    %c0_1 = arith.constant 0 : index
    %3 = vector.load %arg2[%c0, %c0_1] : memref<8x128xi32, #tpu.memory_space<vmem>>, vector<8x128xi32>
    %c0_2 = arith.constant 0 : index
    %c0_3 = arith.constant 0 : index
    %4 = vector.load %arg3[%c0_2, %c0_3] : memref<24x32xbf16, #tpu.memory_space<vmem>>, vector<24x32xbf16>
    %c32_i32 = arith.constant 32 : i32
    %5 = arith.muli %arg1, %c32_i32 : i32
    %6 = tpu.iota {dimensions = array<i32: 0>} : vector<32x128xi32>
    %7 = vector.broadcast %5 : i32 to vector<32x128xi32>
    %8 = arith.addi %6, %7 : vector<32x128xi32>
    %c0_i32_4 = arith.constant 0 : i32
    %9 = vector.broadcast %c0_i32_4 : i32 to vector<32x128xi32>
    %10 = vector.extract_strided_slice %3 {offsets = [0, 0], sizes = [1, 128], strides = [1, 1]} : vector<8x128xi32> to vector<1x128xi32>
    %11 = vector.broadcast %10 : vector<1x128xi32> to vector<32x128xi32>
    %12 = arith.cmpi eq, %11, %8 : vector<32x128xi32>
    %13 = arith.extui %12 : vector<32x128xi1> to vector<32x128xi32>
    %14 = arith.addi %9, %13 : vector<32x128xi32>
    %15 = vector.extract_strided_slice %3 {offsets = [1, 0], sizes = [1, 128], strides = [1, 1]} : vector<8x128xi32> to vector<1x128xi32>
    %16 = vector.broadcast %15 : vector<1x128xi32> to vector<32x128xi32>
    %17 = arith.cmpi eq, %16, %8 : vector<32x128xi32>
    %18 = arith.extui %17 : vector<32x128xi1> to vector<32x128xi32>
    %19 = arith.addi %14, %18 : vector<32x128xi32>
    %20 = vector.extract_strided_slice %3 {offsets = [2, 0], sizes = [1, 128], strides = [1, 1]} : vector<8x128xi32> to vector<1x128xi32>
    %21 = vector.broadcast %20 : vector<1x128xi32> to vector<32x128xi32>
    %22 = arith.cmpi eq, %21, %8 : vector<32x128xi32>
    %23 = arith.extui %22 : vector<32x128xi1> to vector<32x128xi32>
    %24 = arith.addi %19, %23 : vector<32x128xi32>
    %25 = vector.extract_strided_slice %3 {offsets = [3, 0], sizes = [1, 128], strides = [1, 1]} : vector<8x128xi32> to vector<1x128xi32>
    %26 = vector.broadcast %25 : vector<1x128xi32> to vector<32x128xi32>
    %27 = arith.cmpi eq, %26, %8 : vector<32x128xi32>
    %28 = arith.extui %27 : vector<32x128xi1> to vector<32x128xi32>
    %29 = arith.addi %24, %28 : vector<32x128xi32>
    %30 = vector.extract_strided_slice %3 {offsets = [4, 0], sizes = [1, 128], strides = [1, 1]} : vector<8x128xi32> to vector<1x128xi32>
    %31 = vector.broadcast %30 : vector<1x128xi32> to vector<32x128xi32>
    %32 = arith.cmpi eq, %31, %8 : vector<32x128xi32>
    %33 = arith.extui %32 : vector<32x128xi1> to vector<32x128xi32>
    %34 = arith.addi %29, %33 : vector<32x128xi32>
    %35 = vector.extract_strided_slice %3 {offsets = [5, 0], sizes = [1, 128], strides = [1, 1]} : vector<8x128xi32> to vector<1x128xi32>
    %36 = vector.broadcast %35 : vector<1x128xi32> to vector<32x128xi32>
    %37 = arith.cmpi eq, %36, %8 : vector<32x128xi32>
    %38 = arith.extui %37 : vector<32x128xi1> to vector<32x128xi32>
    %39 = arith.addi %34, %38 : vector<32x128xi32>
    %40 = vector.extract_strided_slice %3 {offsets = [6, 0], sizes = [1, 128], strides = [1, 1]} : vector<8x128xi32> to vector<1x128xi32>
    %41 = vector.broadcast %40 : vector<1x128xi32> to vector<32x128xi32>
    %42 = arith.cmpi eq, %41, %8 : vector<32x128xi32>
    %43 = arith.extui %42 : vector<32x128xi1> to vector<32x128xi32>
    %44 = arith.addi %39, %43 : vector<32x128xi32>
    %45 = vector.extract_strided_slice %3 {offsets = [7, 0], sizes = [1, 128], strides = [1, 1]} : vector<8x128xi32> to vector<1x128xi32>
    %46 = vector.broadcast %45 : vector<1x128xi32> to vector<32x128xi32>
    %47 = arith.cmpi eq, %46, %8 : vector<32x128xi32>
    %48 = arith.extui %47 : vector<32x128xi1> to vector<32x128xi32>
    %49 = arith.addi %44, %48 : vector<32x128xi32>
    %50 = arith.sitofp %49 : vector<32x128xi32> to vector<32x128xbf16>
    %c0_5 = arith.constant 0 : index
    %c0_6 = arith.constant 0 : index
    %51 = vector.load %arg5[%c0_5, %c0_6] : memref<24x128xf32, #tpu.memory_space<vmem>>, vector<24x128xf32>
    %cst = arith.constant dense<0.000000e+00> : vector<24x128xf32>
    %52 = tpu.matmul %4, %50, %cst {dimension_numbers = #tpu.dot_dimension_numbers<[1], [0], [0], [1], [0, 0, 1, 1], [], []>} : vector<24x32xbf16>, vector<32x128xbf16>, vector<24x128xf32> -> vector<24x128xf32>
    %53 = arith.addf %51, %52 : vector<24x128xf32>
    %c0_7 = arith.constant 0 : index
    %c0_8 = arith.constant 0 : index
    %54 = vector.load %arg5[%c0_7, %c0_8] : memref<24x128xf32, #tpu.memory_space<vmem>>, vector<24x128xf32>
    tpu.vector_store %arg5[%c0_7, %c0_8], %53 {strides = array<i32>} : memref<24x128xf32, #tpu.memory_space<vmem>>, vector<24x128xf32>,
    %c0_i32_9 = arith.constant 0 : i32
    %55 = arith.cmpi eq, %arg1, %c0_i32_9 : i32
    %56 = arith.extui %55 : i1 to i32
    %c0_i32_10 = arith.constant 0 : i32
    %57 = arith.cmpi ne, %56, %c0_i32_10 : i32
    scf.if %57 {
      %c0_11 = arith.constant 0 : index
      %c0_12 = arith.constant 0 : index
      %58 = vector.load %arg5[%c0_11, %c0_12] : memref<24x128xf32, #tpu.memory_space<vmem>>, vector<24x128xf32>
      %59 = vector.extract_strided_slice %58 {offsets = [0, 0], sizes = [8, 128], strides = [1, 1]} : vector<24x128xf32> to vector<8x128xf32>
      %60 = vector.extract_strided_slice %58 {offsets = [8, 0], sizes = [8, 128], strides = [1, 1]} : vector<24x128xf32> to vector<8x128xf32>
      %61 = vector.extract_strided_slice %58 {offsets = [16, 0], sizes = [1, 128], strides = [1, 1]} : vector<24x128xf32> to vector<1x128xf32>
      %62 = arith.mulf %59, %59 : vector<8x128xf32>
      %63 = arith.subf %62, %60 : vector<8x128xf32>
      %cst_13 = arith.constant dense<0.000000e+00> : vector<128xf32>
      %64 = vector.multi_reduction <add>, %63, %cst_13 [0] : vector<8x128xf32> to vector<128xf32>
      %65 = vector.shape_cast %64 : vector<128xf32> to vector<1x128xf32>
      %cst_14 = arith.constant 5.000000e-01 : f32
      %66 = vector.broadcast %cst_14 : f32 to vector<1x128xf32>
      %67 = arith.mulf %66, %65 : vector<1x128xf32>
      %68 = arith.addf %61, %67 : vector<1x128xf32>
      %c0_15 = arith.constant 0 : index
      %c0_16 = arith.constant 0 : index
      %69 = vector.load %arg4[%c0_15, %c0_16] : memref<1x128xf32, #tpu.memory_space<vmem>>, vector<1x128xf32>
      tpu.vector_store %arg4[%c0_15, %c0_16], %68 {strides = array<i32>} : memref<1x128xf32, #tpu.memory_space<vmem>>, vector<1x128xf32>,
    } else {
    }
    return
  }
  func.func @transform_0(%arg0: i32, %arg1: i32) -> (i32, i32) {
    %c0_i32 = arith.constant 0 : i32
    %c0_i32_0 = arith.constant 0 : i32
    return %c0_i32, %arg0 : i32, i32
  }
  func.func @transform_1(%arg0: i32, %arg1: i32) -> (i32, i32) {
    %c0_i32 = arith.constant 0 : i32
    %c0_i32_0 = arith.constant 0 : i32
    return %c0_i32, %arg1 : i32, i32
  }
  func.func @transform_2(%arg0: i32, %arg1: i32) -> (i32, i32) {
    %c0_i32 = arith.constant 0 : i32
    %c0_i32_0 = arith.constant 0 : i32
    return %c0_i32, %arg0 : i32, i32
  }
}

</mosaic_0001>

<bundles_post_ra>
// kernel: tpu_custom_call.1
= control target key start
LH: loop header
LB: loop body
LE: loop exit
PB: predicated region body
PF: predicated region fallthrough
CT: control target
= control target key end

     0   :  { %7 = vsyncpa [#allocation4], 0  ;;  %s567_s0 = inlined_call_operand.hbm [shape: s32[8,128], index: 0, kind: input, shape index: {}]   ;;  %s568_s1 = inlined_call_operand.hbm [shape: bf16[24,32], index: 1, kind: input, shape index: {}]   ;;  %s569_s2 = inlined_call_operand.hbm [shape: f32[1,128], index: 2, kind: output, shape index: {}]  }
   0x1   :  { %8 = vsyncpa [#allocation7], 0 }
   0x2   :  { %9 = vsyncpa [#allocation5], 0  ;;  %s392_s9 = smov [#allocation3]   ;;  %s393_s11 = smov [#allocation6]  }
   0x3   :  { %s16_s10 = sshll.u32 %s392_s9, 4  ;;  %s25_s12 = sshll.u32 %s393_s11, 4  ;;  %s17_s10 = int_to_ptr.vmem [resolvable:$true] %s16_s10  ;;  %s413_s12 = int_to_ptr.vmem [resolvable:$true] %s25_s12 }
   0x4   :  { %s320_s15 = scalar_lea.hbm %s567_s0, 128 }
   0x5   :  { %p321_p0 = scmp.ne.s32.totalorder %s567_s0, %s320_s15  ;;  %p324_p1 = scmp.lt.u32.totalorder %s320_s15, %s567_s0 }
   0x7   :  { %p326_p2 = pnand %p324_p1, %p321_p0 }
   0x9   :  { %329 = shalt.err (!%p326_p2)
}
   0xa   :  { %s330_s20 = scalar_lea.vmem %s17_s10, 128  ;;  %p335_p4 = scmp.lt.s32.totalorder %s17_s10, %s17_s10 }
   0xb   :  { %p331_p3 = scmp.ne.s32.totalorder %s17_s10, %s330_s20  ;;  %p336_p5 = scmp.lt.s32.totalorder %s330_s20, %s330_s20 }
   0xd   :  { %p337_p6 = por %p336_p5, %p335_p4 }
   0xf   :  { %p338_p7 = pnand %p337_p6, %p331_p3 }
  0x11   :  { %341 = shalt.err (!%p338_p7)
}
  0x12   :  { %19 = dma.hbm_to_vmem [thread:$0]  %s567_s0, 128, %s17_s10, [#allocation4]  }
  0x13   :  { %s342_s25 = scalar_lea.hbm %s568_s1, 192 }
  0x14   :  { %p343_p8 = scmp.ne.s32.totalorder %s568_s1, %s342_s25  ;;  %p346_p9 = scmp.lt.u32.totalorder %s342_s25, %s568_s1 }
  0x16   :  { %p348_p10 = pnand %p346_p9, %p343_p8 }
  0x18   :  { %351 = shalt.err (!%p348_p10)
}
  0x19   :  { %s352_s30 = scalar_lea.vmem %s413_s12, 192  ;;  %p357_p12 = scmp.lt.s32.totalorder %s413_s12, %s413_s12 }
  0x1a   :  { %p353_p11 = scmp.ne.s32.totalorder %s413_s12, %s352_s30  ;;  %p358_p13 = scmp.lt.s32.totalorder %s352_s30, %s352_s30 }
  0x1c   :  { %p359_p0 = por %p358_p13, %p357_p12 }
  0x1e   :  { %p360_p1 = pnand %p359_p0, %p353_p11 }
  0x20   :  { %363 = shalt.err (!%p360_p1)
}
  0x21   :  { %s394_s0 = smov 64   ;;  %s395_s3 = smov 4  }
  0x22   :  { %31 = dma.hbm_to_vmem [thread:$0]  %s568_s1, 192, %s413_s12, [#allocation7], %s394_s0, %s394_s0, %s395_s3  }
  0x23   :  { %386 = dma.done.wait [#allocation4], 128  }
  0x24   :  { %387 = vsyncadd [#allocation4], 4294967168 }
  0x25   :  { %388 = dma.done.wait [#allocation7], 192  }
  0x26   :  { %389 = vsyncadd [#allocation7], 4294967104  ;;  %v51_v0 = vlaneseq  ;;  %vm202_vm0 = vcmask 261120   ;;  %v46_v12 = vld [vmem:[#allocation3] sm:$0xff]  ;;  %v318_v18 = vld [vmem:[#allocation6] sm:$0xff]   ;;  %v396_v23 = vmov 0  }
  0x27   :  { %308 = vmatprep.mubr.msk.bf16.mxu0 %vm202_vm0, %v318_v18  ;;  %s397_s1 = smov [#allocation8]  }
  0x28   :  { %v444_v1 = vshrl.u32 %v51_v0, 7  ;;  %s286_s6 = sshll.u32 %s397_s1, 4  ;;  %s287_s6 = int_to_ptr.vmem [resolvable:$true] %s286_s6 }
  0x29   :  { %s364_s7 = scalar_lea.vmem %s287_s6, 16  ;;  %s368_s8 = scalar_lea.vmem %s287_s6, 32 }
  0x2a   :  { %v63_v2 = vsub.s32 0, %v444_v1  ;;  %v75_v3 = vsub.s32 1, %v444_v1  ;;  %v91_v4 = vsub.s32 2, %v444_v1  ;;  %v107_v5 = vsub.s32 3, %v444_v1  ;;  %p365_p2 = scmp.ne.s32.totalorder %s287_s6, %s364_s7  ;;  %p369_p3 = scmp.lt.s32.totalorder %s287_s6, %s287_s6 }
  0x2b   :  { %v123_v6 = vsub.s32 4, %v444_v1  ;;  %v139_v7 = vsub.s32 5, %v444_v1  ;;  %v155_v8 = vsub.s32 6, %v444_v1  ;;  %v53_v9 = vadd.s32 8, %v444_v1  ;;  %p370_p4 = scmp.lt.s32.totalorder %s368_s8, %s364_s7 }
  0x2c   :  { %v171_v10 = vsub.s32 7, %v444_v1  ;;  %v456_v11 = vadd.s32 16, %v444_v1  ;;  %v459_v13 = vadd.s32 24, %v444_v1  ;;  %v64_v14 = vrot.slane %v46_v12, %v63_v2 }
  0x2d   :  { %v76_v15 = vrot.slane %v46_v12, %v75_v3  ;;  %v461_v16 = vrot.slane %v46_v12, %v91_v4  ;;  %v463_v17 = vrot.slane %v46_v12, %v107_v5  ;;  %v465_v19 = vrot.slane %v46_v12, %v123_v6  ;;  %p371_p5 = por %p370_p4, %p369_p3 }
  0x2e   :  { %v467_v20 = vrot.slane %v46_v12, %v139_v7  ;;  %v469_v21 = vrot.slane %v46_v12, %v155_v8  ;;  %v471_v22 = vrot.slane %v46_v12, %v171_v10  ;;  %vm65_vm1 = vcmp.eq.s32.totalorder %v64_v14, %v444_v1 }
  0x2f   :  { %vm66_vm2 = vcmp.eq.s32.totalorder %v64_v14, %v53_v9  ;;  %vm77_vm3 = vcmp.eq.s32.totalorder %v76_v15, %v444_v1  ;;  %vm78_vm4 = vcmp.eq.s32.totalorder %v76_v15, %v53_v9  ;;  %v69_v24 = vsel %vm65_vm1, 1, %v396_v23  ;;  %p372_p6 = pnand %p371_p5, %p365_p2 }
  0x30   :  { %v70_v25 = vsel %vm66_vm2, 1, %v396_v23  ;;  %v81_v26 = vsel %vm77_vm3, 1, %v396_v23  ;;  %v82_v27 = vsel %vm78_vm4, 1, %v396_v23  ;;  %vm93_vm5 = vcmp.eq.s32.totalorder %v461_v16, %v444_v1 }
  0x31   :  { %v85_v28 = vadd.s32 %v81_v26, %v69_v24  ;;  %v86_v29 = vadd.s32 %v82_v27, %v70_v25  ;;  %vm94_vm6 = vcmp.eq.s32.totalorder %v461_v16, %v53_v9  ;;  %v97_v30 = vsel %vm93_vm5, 1, %v396_v23 }
  0x32   :  { %v98_v31 = vsel %vm94_vm6, 1, %v396_v23  ;;  %vm109_vm7 = vcmp.eq.s32.totalorder %v463_v17, %v444_v1  ;;  %vm110_vm8 = vcmp.eq.s32.totalorder %v463_v17, %v53_v9  ;;  %vm125_vm9 = vcmp.eq.s32.totalorder %v465_v19, %v444_v1 }
  0x33   :  { %v101_v32 = vadd.s32 %v97_v30, %v85_v28  ;;  %v102_v33 = vadd.s32 %v98_v31, %v86_v29  ;;  %v113_v34 = vsel %vm109_vm7, 1, %v396_v23  ;;  %v114_v35 = vsel %vm110_vm8, 1, %v396_v23  ;;  %v319_v29 = vld [vmem:[#allocation6 + $0x8] ss:$0 sps:$4 sm:$0xff]  }
  0x34   :  { %vm126_vm10 = vcmp.eq.s32.totalorder %v465_v19, %v53_v9  ;;  %vm141_vm11 = vcmp.eq.s32.totalorder %v467_v20, %v444_v1  ;;  %vm142_vm12 = vcmp.eq.s32.totalorder %v467_v20, %v53_v9  ;;  %v129_v38 = vsel %vm125_vm9, 1, %v396_v23 }
  0x35   :  { %v117_v36 = vadd.s32 %v113_v34, %v101_v32  ;;  %v118_v37 = vadd.s32 %v114_v35, %v102_v33  ;;  %v130_v39 = vsel %vm126_vm10, 1, %v396_v23  ;;  %v145_v40 = vsel %vm141_vm11, 1, %v396_v23 }
  0x36   :  { %v146_v41 = vsel %vm142_vm12, 1, %v396_v23  ;;  %vm157_vm13 = vcmp.eq.s32.totalorder %v469_v21, %v444_v1  ;;  %vm158_vm14 = vcmp.eq.s32.totalorder %v469_v21, %v53_v9  ;;  %vm173_vm15 = vcmp.eq.s32.totalorder %v471_v22, %v444_v1 }
  0x37   :  { %v133_v42 = vadd.s32 %v129_v38, %v117_v36  ;;  %v134_v43 = vadd.s32 %v130_v39, %v118_v37  ;;  %v161_v44 = vsel %vm157_vm13, 1, %v396_v23  ;;  %v162_v45 = vsel %vm158_vm14, 1, %v396_v23 }
  0x38   :  { %vm174_vm1 = vcmp.eq.s32.totalorder %v471_v22, %v53_v9  ;;  %vm67_vm2 = vcmp.eq.s32.totalorder %v64_v14, %v456_v11  ;;  %vm68_vm3 = vcmp.eq.s32.totalorder %v64_v14, %v459_v13  ;;  %v177_v48 = vsel %vm173_vm15, 1, %v396_v23 }
  0x39   :  { %v149_v46 = vadd.s32 %v145_v40, %v133_v42  ;;  %v150_v47 = vadd.s32 %v146_v41, %v134_v43  ;;  %v178_v49 = vsel %vm174_vm1, 1, %v396_v23  ;;  %v71_v50 = vsel %vm67_vm2, 1, %v396_v23 }
  0x3a   :  { %v72_v51 = vsel %vm68_vm3, 1, %v396_v23  ;;  %vm79_vm4 = vcmp.eq.s32.totalorder %v76_v15, %v456_v11  ;;  %vm80_vm5 = vcmp.eq.s32.totalorder %v76_v15, %v459_v13  ;;  %vm95_vm6 = vcmp.eq.s32.totalorder %v461_v16, %v456_v11 }
  0x3b   :  { %v165_v52 = vadd.s32 %v161_v44, %v149_v46  ;;  %v166_v53 = vadd.s32 %v162_v45, %v150_v47  ;;  %v83_v54 = vsel %vm79_vm4, 1, %v396_v23  ;;  %v84_v55 = vsel %vm80_vm5, 1, %v396_v23 }
  0x3c   :  { %v87_v56 = vadd.s32 %v83_v54, %v71_v50  ;;  %v88_v57 = vadd.s32 %v84_v55, %v72_v51  ;;  %vm96_vm7 = vcmp.eq.s32.totalorder %v461_v16, %v459_v13  ;;  %v99_v60 = vsel %vm95_vm6, 1, %v396_v23 }
  0x3d   :  { %v181_v58 = vadd.s32 %v177_v48, %v165_v52  ;;  %v182_v59 = vadd.s32 %v178_v49, %v166_v53  ;;  %v100_v61 = vsel %vm96_vm7, 1, %v396_v23  ;;  %vm111_vm8 = vcmp.eq.s32.totalorder %v463_v17, %v456_v11 }
  0x3e   :  { %v103_v62 = vadd.s32 %v99_v60, %v87_v56  ;;  %v104_v63 = vadd.s32 %v100_v61, %v88_v57  ;;  %vm112_vm9 = vcmp.eq.s32.totalorder %v463_v17, %v459_v13  ;;  %v115_v2 = vsel %vm111_vm8, 1, %v396_v23 }
  0x3f   :  { %v185_v0 = vcvt.s32.f32 %v181_v58  ;;  %v186_v1 = vcvt.s32.f32 %v182_v59  ;;  %v116_v3 = vsel %vm112_vm9, 1, %v396_v23  ;;  %vm127_vm10 = vcmp.eq.s32.totalorder %v465_v19, %v456_v11 }
  0x40   :  { %v119_v4 = vadd.s32 %v115_v2, %v103_v62  ;;  %v120_v5 = vadd.s32 %v116_v3, %v104_v63  ;;  %vm128_vm11 = vcmp.eq.s32.totalorder %v465_v19, %v459_v13  ;;  %v131_v7 = vsel %vm127_vm10, 1, %v396_v23 }
  0x41   :  { %v189_v6 = vpack.c.bf16 %v186_v1, %v185_v0  ;;  %v132_v8 = vsel %vm128_vm11, 1, %v396_v23  ;;  %vm143_vm12 = vcmp.eq.s32.totalorder %v467_v20, %v456_v11  ;;  %vm144_vm13 = vcmp.eq.s32.totalorder %v467_v20, %v459_v13 }
  0x42   :  { %v135_v9 = vadd.s32 %v131_v7, %v119_v4  ;;  %v136_v10 = vadd.s32 %v132_v8, %v120_v5  ;;  %v147_v12 = vsel %vm143_vm12, 1, %v396_v23  ;;  %v148_v14 = vsel %vm144_vm13, 1, %v396_v23 }
  0x43   :  { %304 = vmatprep.subr.bf16.mxu0 %v189_v6  ;;  %vm159_vm14 = vcmp.eq.s32.totalorder %v469_v21, %v456_v11  ;;  %vm160_vm15 = vcmp.eq.s32.totalorder %v469_v21, %v459_v13  ;;  %vm175_vm1 = vcmp.eq.s32.totalorder %v471_v22, %v456_v11  ;;  %vm176_vm2 = vcmp.eq.s32.totalorder %v471_v22, %v459_v13 }
  0x44   :  { %305 = vmatpush3.bf16.msra.mxu0 %v189_v6  ;;  %v151_v15 = vadd.s32 %v147_v12, %v135_v9  ;;  %v152_v16 = vadd.s32 %v148_v14, %v136_v10  ;;  %v163_v17 = vsel %vm159_vm14, 1, %v396_v23  ;;  %v164_v18 = vsel %vm160_vm15, 1, %v396_v23 }
  0x45   :  { %v179_v19 = vsel %vm175_vm1, 1, %v396_v23  ;;  %v180_v25 = vsel %vm176_vm2, 1, %v396_v23 }
  0x46   :  { %v167_v20 = vadd.s32 %v163_v17, %v151_v15  ;;  %v168_v24 = vadd.s32 %v164_v18, %v152_v16 }
  0x48   :  { %v183_v21 = vadd.s32 %v179_v19, %v167_v20  ;;  %v184_v26 = vadd.s32 %v180_v25, %v168_v24 }
  0x4a   :  { %v187_v27 = vcvt.s32.f32 %v183_v21  ;;  %v188_v11 = vcvt.s32.f32 %v184_v26 }
  0x4c   :  { %v190_v28 = vpack.c.bf16 %v188_v11, %v187_v27 }
  0x4e   :  { %306 = vmatprep.subr.bf16.mxu0 %v190_v28 }
  0x4f   :  { %307 = vmatpush3.bf16.msra.mxu0 %v190_v28 }
  0x52   :  { %309 = vmatmul.mubr.msk.bf16.vlgmr.msra.gmra.mrb[0].mxu0 %vm202_vm0, %v319_v29 }
 0x125   :  { %v310_v30 = vpop.f32.mrb[0].mxu0 }
 0x126   :  { %v243_v31 = vpop.f32.mrb[1].mxu0 }
 0x127   :  { %v269_v32 = vmul.f32 %v243_v31, %v243_v31  ;;  %v311_v13 = vpop.f32.mrb[2].mxu0 }
 0x128   :  { %v246_v22 = vpop.f32.mrb[3].mxu0 }
 0x129   :  { %v270_v33 = vsub.f32 %v269_v32, %v246_v22 }
 0x12b   :  { %v271_v34 = vrot.slane %v270_v33, 4 }
 0x12d   :  { %v272_v35 = vadd.f32 %v271_v34, %v270_v33 }
 0x12f   :  { %v273_v36 = vrot.slane %v272_v35, 2 }
 0x131   :  { %v274_v23 = vadd.f32 %v273_v36, %v272_v35 }
 0x133   :  { %v275_v37 = vrot.slane %v274_v23, 1 }
 0x135   :  { %v276_v38 = vadd.f32 %v275_v37, %v274_v23 }
 0x137   :  { %v277_v39 = vmul.f32 0.5, %v276_v38 }
 0x139   :  { %v278_v40 = vadd.f32 %v310_v30, %v277_v39 }
 0x13b   :  { %279 = vst [vmem:[#allocation8] sm:$0x1] %v278_v40 }
 0x13c   :  { %375 = shalt.err (!%p372_p6)
}
 0x13d   :  { %s376_s11 = scalar_lea.hbm %s569_s2, 16 }
 0x13e   :  { %p377_p7 = scmp.ne.s32.totalorder %s569_s2, %s376_s11  ;;  %p380_p8 = scmp.lt.u32.totalorder %s376_s11, %s569_s2 }
 0x140   :  { %p382_p9 = pnand %p380_p8, %p377_p7 }
 0x142   :  { %385 = shalt.err (!%p382_p9)
}
 0x143   :  { %289 = dma.vmem_to_hbm [thread:$0]  %s287_s6, 16, %s569_s2, [#allocation5]  }
 0x144   :  { %390 = dma.done.wait [#allocation5], 16  }
 0x145   :  { %391 = vsyncadd [#allocation5], 4294967280 }
 0x146   :  { %293 = vsyncpa [#allocation4], 1 }
 0x147   :  { %294 = vsyncpa [#allocation7], 1 }
 0x148   :  { %295 = vsyncpa [#allocation5], 1 }

</bundles_post_ra>
